<compile_context>
chip_gen: v5e
topology: v5e:2x2
jax: 0.10.0
libtpu: 0.0.40
codegen_flags: <defaults>
</compile_context>

<pallas_src>
import jax
import jax.numpy as jnp
from jax.experimental import pallas as pl
from jax.experimental.pallas import tpu as pltpu


def decoder_rnn_kernel(ids_ref, emb_ref, h0_ref, wih_ref, bih_ref,
                       wcat_ref, bcat_ref, logp_ref, hN_ref, x_scr):
    """Kernel body.

    ids_ref : (S,)        int32 token ids (SMEM, scalar-prefetched)
    emb_ref : (V, 1, H)   embedding table (VMEM resident)
    h0_ref  : (1, H)      initial hidden state
    wih_ref : (H, 3H)     W_ih^T  (gate order r, z, n along columns)
    bih_ref : (1, 3H)     b_ih
    wcat_ref: (H, 3H+V)   [W_hh^T | W_out^T]  column-concatenated
    bcat_ref: (1, 3H+V)   [b_hh   | b_out]
    logp_ref: (1, V)      log_softmax(out(output[0]))
    hN_ref  : (1, H)      hidden state after S steps (aliased onto h0's HBM buffer)
    x_scr   : (S, H)      VMEM scratch for the gathered + ReLU'd embeddings
    """
    H = h0_ref.shape[-1]
    G = 3 * H                                   # width of the GRU gate block

    # --- fused embedding gather + ReLU (S = 2, fully unrolled) -------------------------
    x_scr[0:1, :] = jnp.maximum(emb_ref[ids_ref[0]], 0.0)     # (1, H)
    x_scr[1:2, :] = jnp.maximum(emb_ref[ids_ref[1]], 0.0)     # (1, H)
    x = x_scr[...]                                            # (2, H)

    # --- input projection for BOTH timesteps in one MXU pass ---------------------------
    gi_all = jnp.dot(x, wih_ref[...], preferred_element_type=jnp.float32) + bih_ref[...]

    h0 = h0_ref[...]                            # (1, H)
    wcat = wcat_ref[...]                        # (H, 3H+V), 3H+V = 124 <= 128 lanes
    bcat = bcat_ref[...]                        # (1, 3H+V)

    def gru_cell(gi, gh, h_prev):
        # PyTorch GRU gate order (r, z, n).
        r = jax.nn.sigmoid(gi[:, 0:H] + gh[:, 0:H])
        z = jax.nn.sigmoid(gi[:, H:2 * H] + gh[:, H:2 * H])
        n = jnp.tanh(gi[:, 2 * H:3 * H] + r * gh[:, 2 * H:3 * H])
        return (1.0 - z) * n + z * h_prev

    # --- t = 0 : only the recurrence part of W_cat is used -----------------------------
    g0 = jnp.dot(h0, wcat, preferred_element_type=jnp.float32) + bcat     # (1, 3H+V)
    h1 = gru_cell(gi_all[0:1, :], g0[:, 0:G], h0)                         # = GRU output[0]

    # --- t = 1 : recurrence matmul fused with output projection ------------------------
    g1 = jnp.dot(h1, wcat, preferred_element_type=jnp.float32) + bcat     # (1, 3H+V)
    h2 = gru_cell(gi_all[1:2, :], g1[:, 0:G], h1)
    logits = g1[:, G:]                          # = out(output[0]) = h1 @ W_out^T + b_out

    hN_ref[...] = h2

    # --- numerically stable LogSoftmax(dim=1) -------------------------------------------
    m = jnp.max(logits, axis=-1, keepdims=True)
    lse = m + jnp.log(jnp.sum(jnp.exp(logits - m), axis=-1, keepdims=True))
    logp_ref[...] = logits - lse


def prepare_kernel_params(params):
    """One-time repack of PyTorch-layout params into the kernel-friendly layout."""
    H = params["whh_t"].shape[0]
    V = params["wout_t"].shape[1]
    return {
        "emb3": params["embedding"].astype(jnp.float32).reshape(V, 1, H),
        "wih_t": params["wih_t"].astype(jnp.float32),
        "bih": params["bih"].astype(jnp.float32),
        # column-concat: [W_hh^T | W_out^T] and [b_hh | b_out]  ->  (H, 3H+V), (1, 3H+V)
        "w_cat": jnp.concatenate([params["whh_t"], params["wout_t"]], axis=1).astype(jnp.float32),
        "b_cat": jnp.concatenate([params["bhh"], params["bout"]], axis=1).astype(jnp.float32),
    }


def decoder_rnn_forward(input_ids, hidden, kparams):
    """Matches DecoderRNN.forward(input, hidden).

    input_ids: (2,)    int token ids  (forward reshapes the embedding to (2, 1, -1))
    hidden   : (1,1,H) float32
    returns  : (log_probs (1, V), hidden (1, 1, H))
    """
    H = kparams["wih_t"].shape[0]
    G = 3 * H
    V = kparams["w_cat"].shape[1] - G
    S = 2

    ids = input_ids.astype(jnp.int32)
    h0 = hidden.reshape(1, H).astype(jnp.float32)

    grid_spec = pltpu.PrefetchScalarGridSpec(
        num_scalar_prefetch=1,              # ids -> SMEM, available to index_maps / kernel
        grid=(1,),
        in_specs=[
            pl.BlockSpec((V, 1, H), lambda i, ids: (0, 0, 0)),   # embedding table
            pl.BlockSpec((1, H), lambda i, ids: (0, 0)),         # h0
            pl.BlockSpec((H, G), lambda i, ids: (0, 0)),         # W_ih^T
            pl.BlockSpec((1, G), lambda i, ids: (0, 0)),         # b_ih
            pl.BlockSpec((H, G + V), lambda i, ids: (0, 0)),     # [W_hh^T | W_out^T]
            pl.BlockSpec((1, G + V), lambda i, ids: (0, 0)),     # [b_hh   | b_out]
        ],
        out_specs=(
            pl.BlockSpec((1, V), lambda i, ids: (0, 0)),         # log-probs
            pl.BlockSpec((1, H), lambda i, ids: (0, 0)),         # final hidden
        ),
        scratch_shapes=[pltpu.VMEM((S, H), jnp.float32)],        # gathered embeddings
    )

    # Advisory cost hint: tiny flops/bytes, a handful of transcendentals.
    flops = 2 * S * H * G + 2 * S * H * (G + V) + 64 * H + 8 * V
    transcendentals = S * G + V + 1
    bytes_accessed = 4 * (V * H + H * G + G + H * (G + V) + (G + V) + 2 * H + V) + 4 * S

    log_probs, h_out = pl.pallas_call(
        decoder_rnn_kernel,
        out_shape=(
            jax.ShapeDtypeStruct((1, V), jnp.float32),
            jax.ShapeDtypeStruct((1, H), jnp.float32),
        ),
        grid_spec=grid_spec,
        # arg order: (ids, emb3, h0, wih_t, bih, w_cat, b_cat) -> h0 is input 2; hN is output 1
        input_output_aliases={2: 1},
        compiler_params=pltpu.CompilerParams(dimension_semantics=("arbitrary",)),
        cost_estimate=pl.CostEstimate(
            flops=flops, transcendentals=transcendentals, bytes_accessed=bytes_accessed),
    )(ids, kparams["emb3"], h0,
      kparams["wih_t"], kparams["bih"], kparams["w_cat"], kparams["b_cat"])

    return log_probs, h_out.reshape(1, 1, H)


decoder_rnn_forward = jax.jit(decoder_rnn_forward)


def init_params(key, hidden_size, output_size):
    """Deterministic parameter init mirroring the PyTorch module's shapes."""
    H, V = hidden_size, output_size
    ks = jax.random.split(key, 7)
    bound = 1.0 / jnp.sqrt(H)
    return {
        # nn.Embedding(output_size, hidden_size): (V, H)
        "embedding": jax.random.normal(ks[0], (V, H), jnp.float32),
        # nn.GRU(H, H): weight_ih_l0 (3H, H) stored transposed -> (H, 3H); gate order (r, z, n)
        "wih_t": jax.random.uniform(ks[1], (H, 3 * H), jnp.float32, -bound, bound),
        "whh_t": jax.random.uniform(ks[2], (H, 3 * H), jnp.float32, -bound, bound),
        "bih": jax.random.uniform(ks[3], (1, 3 * H), jnp.float32, -bound, bound),
        "bhh": jax.random.uniform(ks[4], (1, 3 * H), jnp.float32, -bound, bound),
        # nn.Linear(H, V): weight (V, H) stored transposed -> (H, V)
        "wout_t": jax.random.uniform(ks[5], (H, V), jnp.float32, -bound, bound),
        "bout": jax.random.uniform(ks[6], (1, V), jnp.float32, -bound, bound),
    }


def _reference_forward(input_ids, hidden, params):
    """Pure-JAX reference (same math, no Pallas) for a sanity check."""
    H = params["whh_t"].shape[0]
    x = jnp.maximum(jnp.take(params["embedding"], input_ids, axis=0), 0.0)  # (2, H)
    h = hidden.reshape(1, H)
    h_first = h
    for t in range(x.shape[0]):
        gi = x[t:t + 1] @ params["wih_t"] + params["bih"]
        gh = h @ params["whh_t"] + params["bhh"]
        r = jax.nn.sigmoid(gi[:, :H] + gh[:, :H])
        z = jax.nn.sigmoid(gi[:, H:2 * H] + gh[:, H:2 * H])
        n = jnp.tanh(gi[:, 2 * H:] + r * gh[:, 2 * H:])
        h = (1.0 - z) * n + z * h
        if t == 0:
            h_first = h
    logits = h_first @ params["wout_t"] + params["bout"]
    logp = logits - jax.scipy.special.logsumexp(logits, axis=1, keepdims=True)
    return logp, h.reshape(1, 1, H)


if __name__ == "__main__":
    hidden_size = 28     # matches the PyTorch script
    output_size = 40     # vocabulary size (small, synthetic)

    key = jax.random.PRNGKey(0)
    params = init_params(key, hidden_size, output_size)
    kparams = prepare_kernel_params(params)   # one-time weight repack for the kernel

    # forward() does `.view(2, 1, -1)` after the embedding -> 2 token ids, batch 1.
    input_ids = jnp.array([3, 7], dtype=jnp.int32)
    hidden0 = jnp.zeros((1, 1, hidden_size), jnp.float32)   # initHidden()

    log_probs, hidden_out = decoder_rnn_forward(input_ids, hidden0, kparams)
    jax.block_until_ready((log_probs, hidden_out))

    # sanity check against pure-JAX reference
    ref_logp, ref_h = _reference_forward(input_ids, hidden0, params)
    assert jnp.allclose(log_probs, ref_logp, rtol=1e-4, atol=1e-4)
    assert jnp.allclose(hidden_out, ref_h, rtol=1e-4, atol=1e-4)
    assert log_probs.shape == (1, output_size)
    assert hidden_out.shape == (1, 1, hidden_size)

    print("KERNEL_OK")
</pallas_src>

<mosaic_0001>
module attributes {stable_mosaic.version = 11 : i64} {
  func.func @decoder_rnn_kernel(%arg0: i32, %arg1: memref<2xi32, #tpu.memory_space<smem>>, %arg2: memref<40x1x28xf32, #tpu.memory_space<vmem>>, %arg3: memref<1x28xf32, #tpu.memory_space<vmem>>, %arg4: memref<28x84xf32, #tpu.memory_space<vmem>>, %arg5: memref<1x84xf32, #tpu.memory_space<vmem>>, %arg6: memref<28x124xf32, #tpu.memory_space<vmem>>, %arg7: memref<1x124xf32, #tpu.memory_space<vmem>>, %arg8: memref<1x40xf32, #tpu.memory_space<vmem>>, %arg9: memref<1x28xf32, #tpu.memory_space<vmem>>, %arg10: memref<2x28xf32, #tpu.memory_space<vmem>>) attributes {dimension_semantics = [#tpu.dimension_semantics<arbitrary>], iteration_bounds = array<i64: 1>, scalar_prefetch = 1 : i64, scratch_operands = 1 : i64, tpu.core_type = #tpu.core_type<tc>, window_params = [{pipeline_mode = #tpu.pipeline_mode<synchronous>, transform_indices = @transform_0, window_bounds = array<i64: 40, 1, 28>}, {pipeline_mode = #tpu.pipeline_mode<synchronous>, transform_indices = @transform_1, window_bounds = array<i64: 1, 28>}, {pipeline_mode = #tpu.pipeline_mode<synchronous>, transform_indices = @transform_2, window_bounds = array<i64: 28, 84>}, {pipeline_mode = #tpu.pipeline_mode<synchronous>, transform_indices = @transform_3, window_bounds = array<i64: 1, 84>}, {pipeline_mode = #tpu.pipeline_mode<synchronous>, transform_indices = @transform_4, window_bounds = array<i64: 28, 124>}, {pipeline_mode = #tpu.pipeline_mode<synchronous>, transform_indices = @transform_5, window_bounds = array<i64: 1, 124>}, {pipeline_mode = #tpu.pipeline_mode<synchronous>, transform_indices = @transform_6, window_bounds = array<i64: 1, 40>}, {pipeline_mode = #tpu.pipeline_mode<synchronous>, transform_indices = @transform_7, window_bounds = array<i64: 1, 28>}]} {
    %c0 = arith.constant 0 : index
    %0 = memref.load %arg1[%c0] : memref<2xi32, #tpu.memory_space<smem>>
    %1 = arith.index_cast %0 : i32 to index
    %c0_0 = arith.constant 0 : index
    %c0_1 = arith.constant 0 : index
    %2 = vector.load %arg2[%1, %c0_0, %c0_1] : memref<40x1x28xf32, #tpu.memory_space<vmem>>, vector<1x1x28xf32>
    %3 = vector.shape_cast %2 : vector<1x1x28xf32> to vector<1x28xf32>
    %cst = arith.constant 0.000000e+00 : f32
    %4 = vector.broadcast %cst : f32 to vector<1x28xf32>
    %5 = arith.maximumf %3, %4 : vector<1x28xf32>
    %c0_2 = arith.constant 0 : index
    %c0_3 = arith.constant 0 : index
    %6 = vector.load %arg10[%c0_2, %c0_3] : memref<2x28xf32, #tpu.memory_space<vmem>>, vector<1x28xf32>
    tpu.vector_store %arg10[%c0_2, %c0_3], %5 {strides = array<i32>} : memref<2x28xf32, #tpu.memory_space<vmem>>, vector<1x28xf32>,
    %c1 = arith.constant 1 : index
    %7 = memref.load %arg1[%c1] : memref<2xi32, #tpu.memory_space<smem>>
    %8 = arith.index_cast %7 : i32 to index
    %c0_4 = arith.constant 0 : index
    %c0_5 = arith.constant 0 : index
    %9 = vector.load %arg2[%8, %c0_4, %c0_5] : memref<40x1x28xf32, #tpu.memory_space<vmem>>, vector<1x1x28xf32>
    %10 = vector.shape_cast %9 : vector<1x1x28xf32> to vector<1x28xf32>
    %cst_6 = arith.constant 0.000000e+00 : f32
    %11 = vector.broadcast %cst_6 : f32 to vector<1x28xf32>
    %12 = arith.maximumf %10, %11 : vector<1x28xf32>
    %c1_7 = arith.constant 1 : index
    %c0_8 = arith.constant 0 : index
    %13 = vector.load %arg10[%c1_7, %c0_8] : memref<2x28xf32, #tpu.memory_space<vmem>>, vector<1x28xf32>
    tpu.vector_store %arg10[%c1_7, %c0_8], %12 {strides = array<i32>} : memref<2x28xf32, #tpu.memory_space<vmem>>, vector<1x28xf32>,
    %c0_9 = arith.constant 0 : index
    %c0_10 = arith.constant 0 : index
    %14 = vector.load %arg10[%c0_9, %c0_10] : memref<2x28xf32, #tpu.memory_space<vmem>>, vector<2x28xf32>
    %c0_11 = arith.constant 0 : index
    %c0_12 = arith.constant 0 : index
    %15 = vector.load %arg4[%c0_11, %c0_12] : memref<28x84xf32, #tpu.memory_space<vmem>>, vector<28x84xf32>
    %cst_13 = arith.constant dense<0.000000e+00> : vector<2x84xf32>
    %16 = tpu.matmul %14, %15, %cst_13 {dimension_numbers = #tpu.dot_dimension_numbers<[1], [0], [0], [1], [0, 0, 1, 1], [], []>} : vector<2x28xf32>, vector<28x84xf32>, vector<2x84xf32> -> vector<2x84xf32>
    %c0_14 = arith.constant 0 : index
    %c0_15 = arith.constant 0 : index
    %17 = vector.load %arg5[%c0_14, %c0_15] : memref<1x84xf32, #tpu.memory_space<vmem>>, vector<1x84xf32>
    %18 = vector.broadcast %17 : vector<1x84xf32> to vector<2x84xf32>
    %19 = arith.addf %16, %18 : vector<2x84xf32>
    %c0_16 = arith.constant 0 : index
    %c0_17 = arith.constant 0 : index
    %20 = vector.load %arg3[%c0_16, %c0_17] : memref<1x28xf32, #tpu.memory_space<vmem>>, vector<1x28xf32>
    %c0_18 = arith.constant 0 : index
    %c0_19 = arith.constant 0 : index
    %21 = vector.load %arg6[%c0_18, %c0_19] : memref<28x124xf32, #tpu.memory_space<vmem>>, vector<28x124xf32>
    %c0_20 = arith.constant 0 : index
    %c0_21 = arith.constant 0 : index
    %22 = vector.load %arg7[%c0_20, %c0_21] : memref<1x124xf32, #tpu.memory_space<vmem>>, vector<1x124xf32>
    %cst_22 = arith.constant dense<0.000000e+00> : vector<1x124xf32>
    %23 = tpu.matmul %20, %21, %cst_22 {dimension_numbers = #tpu.dot_dimension_numbers<[1], [0], [0], [1], [0, 0, 1, 1], [], []>} : vector<1x28xf32>, vector<28x124xf32>, vector<1x124xf32> -> vector<1x124xf32>
    %24 = arith.addf %23, %22 : vector<1x124xf32>
    %25 = vector.extract_strided_slice %19 {offsets = [0, 0], sizes = [1, 84], strides = [1, 1]} : vector<2x84xf32> to vector<1x84xf32>
    %26 = vector.extract_strided_slice %24 {offsets = [0, 0], sizes = [1, 84], strides = [1, 1]} : vector<1x124xf32> to vector<1x84xf32>
    %27 = vector.extract_strided_slice %25 {offsets = [0, 0], sizes = [1, 28], strides = [1, 1]} : vector<1x84xf32> to vector<1x28xf32>
    %28 = vector.extract_strided_slice %26 {offsets = [0, 0], sizes = [1, 28], strides = [1, 1]} : vector<1x84xf32> to vector<1x28xf32>
    %29 = arith.addf %27, %28 : vector<1x28xf32>
    %30 = arith.negf %29 : vector<1x28xf32>
    %31 = math.exp %30 : vector<1x28xf32>
    %cst_23 = arith.constant 1.000000e+00 : f32
    %32 = vector.broadcast %cst_23 : f32 to vector<1x28xf32>
    %33 = arith.addf %32, %31 : vector<1x28xf32>
    %34 = arith.divf %32, %33 : vector<1x28xf32>
    %35 = vector.extract_strided_slice %25 {offsets = [0, 28], sizes = [1, 28], strides = [1, 1]} : vector<1x84xf32> to vector<1x28xf32>
    %36 = vector.extract_strided_slice %26 {offsets = [0, 28], sizes = [1, 28], strides = [1, 1]} : vector<1x84xf32> to vector<1x28xf32>
    %37 = arith.addf %35, %36 : vector<1x28xf32>
    %38 = arith.negf %37 : vector<1x28xf32>
    %39 = math.exp %38 : vector<1x28xf32>
    %cst_24 = arith.constant 1.000000e+00 : f32
    %40 = vector.broadcast %cst_24 : f32 to vector<1x28xf32>
    %41 = arith.addf %40, %39 : vector<1x28xf32>
    %42 = arith.divf %40, %41 : vector<1x28xf32>
    %43 = vector.extract_strided_slice %25 {offsets = [0, 56], sizes = [1, 28], strides = [1, 1]} : vector<1x84xf32> to vector<1x28xf32>
    %44 = vector.extract_strided_slice %26 {offsets = [0, 56], sizes = [1, 28], strides = [1, 1]} : vector<1x84xf32> to vector<1x28xf32>
    %45 = arith.mulf %34, %44 : vector<1x28xf32>
    %46 = arith.addf %43, %45 : vector<1x28xf32>
    %47 = math.tanh %46 : vector<1x28xf32>
    %cst_25 = arith.constant 1.000000e+00 : f32
    %48 = vector.broadcast %cst_25 : f32 to vector<1x28xf32>
    %49 = arith.subf %48, %42 : vector<1x28xf32>
    %50 = arith.mulf %49, %47 : vector<1x28xf32>
    %51 = arith.mulf %42, %20 : vector<1x28xf32>
    %52 = arith.addf %50, %51 : vector<1x28xf32>
    %cst_26 = arith.constant dense<0.000000e+00> : vector<1x124xf32>
    %53 = tpu.matmul %52, %21, %cst_26 {dimension_numbers = #tpu.dot_dimension_numbers<[1], [0], [0], [1], [0, 0, 1, 1], [], []>} : vector<1x28xf32>, vector<28x124xf32>, vector<1x124xf32> -> vector<1x124xf32>
    %54 = arith.addf %53, %22 : vector<1x124xf32>
    %55 = vector.extract_strided_slice %19 {offsets = [1, 0], sizes = [1, 84], strides = [1, 1]} : vector<2x84xf32> to vector<1x84xf32>
    %56 = vector.extract_strided_slice %54 {offsets = [0, 0], sizes = [1, 84], strides = [1, 1]} : vector<1x124xf32> to vector<1x84xf32>
    %57 = vector.extract_strided_slice %55 {offsets = [0, 0], sizes = [1, 28], strides = [1, 1]} : vector<1x84xf32> to vector<1x28xf32>
    %58 = vector.extract_strided_slice %56 {offsets = [0, 0], sizes = [1, 28], strides = [1, 1]} : vector<1x84xf32> to vector<1x28xf32>
    %59 = arith.addf %57, %58 : vector<1x28xf32>
    %60 = arith.negf %59 : vector<1x28xf32>
    %61 = math.exp %60 : vector<1x28xf32>
    %cst_27 = arith.constant 1.000000e+00 : f32
    %62 = vector.broadcast %cst_27 : f32 to vector<1x28xf32>
    %63 = arith.addf %62, %61 : vector<1x28xf32>
    %64 = arith.divf %62, %63 : vector<1x28xf32>
    %65 = vector.extract_strided_slice %55 {offsets = [0, 28], sizes = [1, 28], strides = [1, 1]} : vector<1x84xf32> to vector<1x28xf32>
    %66 = vector.extract_strided_slice %56 {offsets = [0, 28], sizes = [1, 28], strides = [1, 1]} : vector<1x84xf32> to vector<1x28xf32>
    %67 = arith.addf %65, %66 : vector<1x28xf32>
    %68 = arith.negf %67 : vector<1x28xf32>
    %69 = math.exp %68 : vector<1x28xf32>
    %cst_28 = arith.constant 1.000000e+00 : f32
    %70 = vector.broadcast %cst_28 : f32 to vector<1x28xf32>
    %71 = arith.addf %70, %69 : vector<1x28xf32>
    %72 = arith.divf %70, %71 : vector<1x28xf32>
    %73 = vector.extract_strided_slice %55 {offsets = [0, 56], sizes = [1, 28], strides = [1, 1]} : vector<1x84xf32> to vector<1x28xf32>
    %74 = vector.extract_strided_slice %56 {offsets = [0, 56], sizes = [1, 28], strides = [1, 1]} : vector<1x84xf32> to vector<1x28xf32>
    %75 = arith.mulf %64, %74 : vector<1x28xf32>
    %76 = arith.addf %73, %75 : vector<1x28xf32>
    %77 = math.tanh %76 : vector<1x28xf32>
    %cst_29 = arith.constant 1.000000e+00 : f32
    %78 = vector.broadcast %cst_29 : f32 to vector<1x28xf32>
    %79 = arith.subf %78, %72 : vector<1x28xf32>
    %80 = arith.mulf %79, %77 : vector<1x28xf32>
    %81 = arith.mulf %72, %52 : vector<1x28xf32>
    %82 = arith.addf %80, %81 : vector<1x28xf32>
    %83 = vector.extract_strided_slice %54 {offsets = [0, 84], sizes = [1, 40], strides = [1, 1]} : vector<1x124xf32> to vector<1x40xf32>
    %c0_30 = arith.constant 0 : index
    %c0_31 = arith.constant 0 : index
    %84 = vector.load %arg9[%c0_30, %c0_31] : memref<1x28xf32, #tpu.memory_space<vmem>>, vector<1x28xf32>
    tpu.vector_store %arg9[%c0_30, %c0_31], %82 {strides = array<i32>} : memref<1x28xf32, #tpu.memory_space<vmem>>, vector<1x28xf32>,
    %cst_32 = arith.constant dense<0xFF800000> : vector<1xf32>
    %85 = vector.multi_reduction <maximumf>, %83, %cst_32 [1] : vector<1x40xf32> to vector<1xf32>
    %86 = vector.shape_cast %85 : vector<1xf32> to vector<1x1xf32>
    %87 = vector.broadcast %86 : vector<1x1xf32> to vector<1x40xf32>
    %88 = arith.subf %83, %87 : vector<1x40xf32>
    %89 = math.exp %88 : vector<1x40xf32>
    %cst_33 = arith.constant dense<0.000000e+00> : vector<1xf32>
    %90 = vector.multi_reduction <add>, %89, %cst_33 [1] : vector<1x40xf32> to vector<1xf32>
    %91 = vector.shape_cast %90 : vector<1xf32> to vector<1x1xf32>
    %92 = math.log %91 : vector<1x1xf32>
    %93 = arith.addf %86, %92 : vector<1x1xf32>
    %94 = vector.broadcast %93 : vector<1x1xf32> to vector<1x40xf32>
    %95 = arith.subf %83, %94 : vector<1x40xf32>
    %c0_34 = arith.constant 0 : index
    %c0_35 = arith.constant 0 : index
    %96 = vector.load %arg8[%c0_34, %c0_35] : memref<1x40xf32, #tpu.memory_space<vmem>>, vector<1x40xf32>
    tpu.vector_store %arg8[%c0_34, %c0_35], %95 {strides = array<i32>} : memref<1x40xf32, #tpu.memory_space<vmem>>, vector<1x40xf32>,
    return
  }
  func.func @transform_0(%arg0: i32, %arg1: memref<2xi32, #tpu.memory_space<smem>>) -> (i32, i32, i32) {
    %c0_i32 = arith.constant 0 : i32
    %c0_i32_0 = arith.constant 0 : i32
    %c0_i32_1 = arith.constant 0 : i32
    %c0_i32_2 = arith.constant 0 : i32
    return %c0_i32, %c0_i32_0, %c0_i32_1 : i32, i32, i32
  }
  func.func @transform_1(%arg0: i32, %arg1: memref<2xi32, #tpu.memory_space<smem>>) -> (i32, i32) {
    %c0_i32 = arith.constant 0 : i32
    %c0_i32_0 = arith.constant 0 : i32
    %c0_i32_1 = arith.constant 0 : i32
    return %c0_i32, %c0_i32_0 : i32, i32
  }
  func.func @transform_2(%arg0: i32, %arg1: memref<2xi32, #tpu.memory_space<smem>>) -> (i32, i32) {
    %c0_i32 = arith.constant 0 : i32
    %c0_i32_0 = arith.constant 0 : i32
    %c0_i32_1 = arith.constant 0 : i32
    return %c0_i32, %c0_i32_0 : i32, i32
  }
  func.func @transform_3(%arg0: i32, %arg1: memref<2xi32, #tpu.memory_space<smem>>) -> (i32, i32) {
    %c0_i32 = arith.constant 0 : i32
    %c0_i32_0 = arith.constant 0 : i32
    %c0_i32_1 = arith.constant 0 : i32
    return %c0_i32, %c0_i32_0 : i32, i32
  }
  func.func @transform_4(%arg0: i32, %arg1: memref<2xi32, #tpu.memory_space<smem>>) -> (i32, i32) {
    %c0_i32 = arith.constant 0 : i32
    %c0_i32_0 = arith.constant 0 : i32
    %c0_i32_1 = arith.constant 0 : i32
    return %c0_i32, %c0_i32_0 : i32, i32
  }
  func.func @transform_5(%arg0: i32, %arg1: memref<2xi32, #tpu.memory_space<smem>>) -> (i32, i32) {
    %c0_i32 = arith.constant 0 : i32
    %c0_i32_0 = arith.constant 0 : i32
    %c0_i32_1 = arith.constant 0 : i32
    return %c0_i32, %c0_i32_0 : i32, i32
  }
  func.func @transform_6(%arg0: i32, %arg1: memref<2xi32, #tpu.memory_space<smem>>) -> (i32, i32) {
    %c0_i32 = arith.constant 0 : i32
    %c0_i32_0 = arith.constant 0 : i32
    %c0_i32_1 = arith.constant 0 : i32
    return %c0_i32, %c0_i32_0 : i32, i32
  }
  func.func @transform_7(%arg0: i32, %arg1: memref<2xi32, #tpu.memory_space<smem>>) -> (i32, i32) {
    %c0_i32 = arith.constant 0 : i32
    %c0_i32_0 = arith.constant 0 : i32
    %c0_i32_1 = arith.constant 0 : i32
    return %c0_i32, %c0_i32_0 : i32, i32
  }
}

</mosaic_0001>

<bundles_post_ra>
// kernel: decoder_rnn_forward.1
= control target key start
LH: loop header
LB: loop body
LE: loop exit
PB: predicated region body
PF: predicated region fallthrough
CT: control target
= control target key end

     0   :  { %s351_s30 = smov [#allocation4]   ;;  %s470_s0 = inlined_call_operand.vmem [shape: s32[2], index: 0, kind: input, shape index: {}]   ;;  %s471_s1 = inlined_call_operand.vmem [shape: f32[40,1,28], index: 1, kind: input, shape index: {}]   ;;  %s472_s2 = inlined_call_operand.vmem [shape: f32[1,28], index: 2, kind: input, shape index: {}, may-alias: {2,8}]   ;;  %s473_s3 = inlined_call_operand.vmem [shape: f32[28,84], index: 3, kind: input, shape index: {}]   ;;  %s474_s4 = inlined_call_operand.vmem [shape: f32[1,84], index: 4, kind: input, shape index: {}]   ;;  %s475_s5 = inlined_call_operand.vmem [shape: f32[28,124], index: 5, kind: input, shape index: {}]   ;;  %s476_s6 = inlined_call_operand.vmem [shape: f32[1,124], index: 6, kind: input, shape index: {}]   ;;  %s477_s7 = inlined_call_operand.hbm [shape: f32[1,40], index: 7, kind: output, shape index: {0}]   ;;  %s478_s8 = inlined_call_operand.vmem [shape: f32[1,28], index: 8, kind: output, shape index: {1}, may-alias: {2,8}]  }
   0x1   :  { %s15_s29 = sshll.u32 %s470_s0, 4  ;;  %s16_s29 = int_to_ptr.vmem [resolvable:$true] %s15_s29 }
   0x2   :  { %18 = dma.vmem_to_smem %s16_s29, 16, %s351_s30, [#allocation3] }
   0x3   :  { %347 = dma.done.wait [#allocation3], 16 }
   0x4   :  { %348 = vsyncadd [#allocation3], 4294967280 }
   0x5   :  { %21 = sfence }
   0x6   :  { %vm59_vm0 = vcmask 1043456   ;;  %v87_v0 = vld [vmem:[%s475_s5 + $0x18] sm:$0xf]  ;;  %v86_v1 = vld [vmem:[%s475_s5 + $0x10] sm:$0xff]  ;;  %v85_v3 = vld [vmem:[%s475_s5 + $0x8] sm:$0xff]  ;;  %s35_s18 = sld [smem:[#allocation4]] }
   0x7   :  { %281 = vmatpush.msk.msra.mxu1 %vm59_vm0, %v87_v0  ;;  %v50_v2 = vld [vmem:[%s473_s3 + $0x18] sm:$0xf]  ;;  %284 = vmatpush.msk.msra.mxu2 %vm59_vm0, %v87_v0  ;;  %v49_v4 = vld [vmem:[%s473_s3 + $0x10] sm:$0xff]  ;;  %v48_v5 = vld [vmem:[%s473_s3 + $0x8] sm:$0xff]  ;;  %s278_s21 = sld [smem:[#allocation4 + $0x1]] }
   0x8   :  { %279 = vmatpush.msk.msra.mxu0 %vm59_vm0, %v50_v2  ;;  %v84_v6 = vld [vmem:[%s475_s5] sm:$0xff] }
   0x9   :  { %108 = vmatpush.msra.mxu1 %v86_v1  ;;  %176 = vmatpush.msra.mxu2 %v86_v1 }
   0xa   :  { %76 = vmatpush.msra.mxu0 %v49_v4 }
   0xb   :  { %22 = vsyncpa [#allocation6], 0  ;;  %109 = vmatpush.msra.mxu1 %v85_v3  ;;  %vm55_vm1 = vcmask 228352   ;;  %v83_v7 = vld [vmem:[%s472_s2] sm:$0x1]  ;;  %177 = vmatpush.msra.mxu2 %v85_v3  ;;  %vm39_vm2 = vcmask 221184  }
   0xc   :  { %v47_v8 = vld [vmem:[%s473_s3] sm:$0xff]  ;;  %77 = vmatpush.msra.mxu0 %v48_v5  ;;  %s36_s29 = scalar_lea.vmem %s471_s1, %s35_s18  ;;  %s352_s11 = smov 72   ;;  %v152_v39 = vperm.slane %v83_v7, 0  ;;  %vm232_vm7 = vcmask 1008288   ;;  %vm243_vm12 = vcmask 319488   ;;  %vm230_vm13 = vcmask 222209  }
   0xd   :  { %110 = vmatpush.msra.mxu1 %v84_v6  ;;  %178 = vmatpush.msra.mxu2 %v84_v6  ;;  %v37_v9 = vld [vmem:[%s36_s29] sm:$0x1]  ;;  %s42_s2 = scalar_lea.vmem %s471_s1, %s278_s21  ;;  %s353_s1 = smov 56  }
   0xe   :  { %282 = vmatmul.msk.f32.vlgmr.msra.gmra.mxu1 %vm55_vm1, %v83_v7  ;;  %78 = vmatpush.msra.mxu0 %v47_v8  ;;  %v38_v10 = vmax.f32 %v37_v9, 0.0  ;;  %v43_v11 = vld [vmem:[%s42_s2] sm:$0x1]  ;;  %s356_s14 = smov 44   ;;  %s357_s0 = smov [#allocation5]  }
   0xf   :  { %v44_v12 = vmax.f32 %v43_v11, 0.0  ;;  %v88_v14 = vld [vmem:[%s476_s6] sm:$0x1]  ;;  %s355_s6 = smov 28   ;;  %s261_s15 = sshll.u32 %s357_s0, 4  ;;  %s262_s15 = int_to_ptr.vmem [resolvable:$true] %s261_s15 }
  0x10   :  { %40 = vst.msk [vmem:[#allocation2] sm:$0x1] %vm39_vm2, %v38_v10  ;;  %v294_v17 = vld [vmem:[%s474_s4] ss:$0 sm:$0xff]  ;;  %s354_s4 = smov 100   ;;  %s263_s18 = sshll.u32 %s477_s7, 4  ;;  %s264_s18 = int_to_ptr.hbm [resolvable:$true] %s263_s18 }
  0x11   :  { %45 = vst.msk [vmem:[#allocation2 + $0x1] sm:$0x1] %vm39_vm2, %v44_v12 }
  0x18   :  { %v46_v13 = vld [vmem:[#allocation2] sm:$0x3] }
  0x19   :  { %280 = vmatmul.msk.f32.vlgmr.msra.gmra.mxu0 %vm55_vm1, %v46_v13 }
  0x8b   :  { %v112_v15 = vpop.f32.mrf.mxu1 }
  0x8c   :  { %v113_v16 = vadd.f32 %v112_v15, %v88_v14 }
  0x8e   :  { %136 = vrot.lane.b32.xlu0 %v113_v16, %s352_s11 }
  0x96   :  { %v80_v18 = vpop.f32.mrf.mxu0 }
  0x97   :  { %v448_v19 = vadd.f32 %v294_v17, %v80_v18 }
  0x99   :  { %v115_v20 = vadd.f32 %v113_v16, %v448_v19 }
  0x9b   :  { %v283_v21 = vmul.f32 -1.442695, %v115_v20 }
  0x9d   :  { %295 = vpow2.f32 %v283_v21 }
  0xa3   :  { %v296_v22 = vpop.eup %295 }
  0xa4   :  { %v119_v23 = vadd.f32 1.0, %v296_v22 }
  0xa6   :  { %297 = vrcp.f32 %v119_v23  ;;  %v131_v29 = vand.u32 2147483648, %v119_v23  ;;  %vm125_vm4 = vweird.f32 %v119_v23  ;;  %v129_v30 = vand.u32 2147483647, %v119_v23 }
  0xa8   :  { %v132_v32 = vor.u32 1.1754944e-38, %v131_v29  ;;  %vm130_vm6 = vcmp.eq.f32.partialorder %v129_v30, 8.507059e+37 }
  0xac   :  { %v298_v24 = vpop.eup %297 }
  0xad   :  { %v121_v25 = vmul.f32 %v298_v24, %v119_v23  ;;  %vm126_vm3 = vweird.f32 %v298_v24 }
  0xae   :  { %vm127_vm5 = vmor %vm125_vm4, %vm126_vm3 }
  0xaf   :  { %v122_v26 = vsub.f32 1.0, %v121_v25 }
  0xb1   :  { %v123_v27 = vmul.f32 %v298_v24, %v122_v26 }
  0xb3   :  { %v124_v28 = vadd.f32 %v298_v24, %v123_v27 }
  0xb5   :  { %v128_v31 = vsel %vm127_vm5, %v298_v24, %v124_v28 }
  0xb6   :  { %v133_v34 = vsel %vm130_vm6, %v132_v32, %v128_v31 }
  0xb7   :  { %v146_v41 = vsub.f32 1.0, %v133_v34 }
 0x100   :  { %v137_v33 = vpop.permute.xlu0 %136 }
 0x101   :  { %v139_v35 = vmul.f32 %v137_v33, %v133_v34 }
 0x103   :  { %141 = vrot.lane.b32.xlu0 %v139_v35, %s353_s1 }
 0x175   :  { %v142_v36 = vpop.permute.xlu0 %141 }
 0x176   :  { %v144_v37 = vadd.f32 %v142_v36, %v448_v19 }
 0x178   :  { %299 = vtanh.f32 %v144_v37 }
 0x17e   :  { %v300_v38 = vpop.eup %299 }
 0x17f   :  { %148 = vrot.lane.b32.xlu1 %v300_v38, %s354_s4 }
 0x187   :  { %153 = vrot.lane.b32.xlu1 %v152_v39, %s355_s6 }
 0x1f1   :  { %v149_v40 = vpop.permute.xlu1 %148 }
 0x1f2   :  { %v151_v43 = vmul.f32 %v149_v40, %v146_v41 }
 0x1f9   :  { %v154_v42 = vpop.permute.xlu1 %153 }
 0x1fa   :  { %v156_v44 = vmul.f32 %v154_v42, %v133_v34 }
 0x1fc   :  { %v157_v45 = vadd.f32 %v156_v44, %v151_v43 }
 0x1fe   :  { %159 = vrot.lane.b32.xlu2 %v157_v45, %s354_s4  ;;  %v222_v20 = vrot.slane %v157_v45, 7 }
 0x258   :  { %v160_v46 = vpop.permute.xlu2 %159 }
 0x259   :  { %285 = vmatmul.msk.f32.vlgmr.msra.gmra.mxu2 %vm55_vm1, %v160_v46 }
 0x2dc   :  { %v180_v47 = vpop.f32.mrf.mxu2 }
 0x2dd   :  { %v181_v48 = vadd.f32 %v180_v47, %v88_v14 }
 0x2df   :  { %v233_v49 = vsel %vm232_vm7, %v181_v48, -inf  ;;  %v184_v50 = vrot.slane %v181_v48, 7 }
 0x2e0   :  { %234 = vmax.xlane.f32.xlu2 %v233_v49 }
 0x2e1   :  { %206 = vrot.lane.b32.xlu0 %v184_v50, %s352_s11  ;;  %v186_v51 = vadd.f32 %v184_v50, %v448_v19 }
 0x2e3   :  { %v286_v52 = vmul.f32 -1.442695, %v186_v51 }
 0x2e5   :  { %301 = vpow2.f32 %v286_v52 }
 0x2eb   :  { %v302_v53 = vpop.eup %301 }
 0x2ec   :  { %v190_v54 = vadd.f32 1.0, %v302_v53 }
 0x2ee   :  { %303 = vrcp.f32 %v190_v54  ;;  %v202_v60 = vand.u32 2147483648, %v190_v54  ;;  %vm196_vm9 = vweird.f32 %v190_v54  ;;  %v200_v61 = vand.u32 2147483647, %v190_v54 }
 0x2f0   :  { %v203_v63 = vor.u32 1.1754944e-38, %v202_v60  ;;  %vm201_vm11 = vcmp.eq.f32.partialorder %v200_v61, 8.507059e+37 }
 0x2f4   :  { %v304_v55 = vpop.eup %303 }
 0x2f5   :  { %v192_v56 = vmul.f32 %v304_v55, %v190_v54  ;;  %vm197_vm8 = vweird.f32 %v304_v55 }
 0x2f6   :  { %vm198_vm10 = vmor %vm196_vm9, %vm197_vm8 }
 0x2f7   :  { %v193_v57 = vsub.f32 1.0, %v192_v56 }
 0x2f9   :  { %v194_v58 = vmul.f32 %v304_v55, %v193_v57 }
 0x2fb   :  { %v195_v59 = vadd.f32 %v304_v55, %v194_v58 }
 0x2fd   :  { %v199_v62 = vsel %vm198_vm10, %v304_v55, %v195_v59 }
 0x2fe   :  { %v204_v2 = vsel %vm201_vm11, %v203_v63, %v199_v62 }
 0x2ff   :  { %v216_v18 = vsub.f32 1.0, %v204_v2  ;;  %v224_v21 = vmul.f32 %v222_v20, %v204_v2 }
 0x353   :  { %v235_v0 = vpop.xlane.xlu2 %234  ;;  %v207_v1 = vpop.permute.xlu0 %206 }
 0x354   :  { %v236_v3 = vsub.f32 %v181_v48, %v235_v0  ;;  %v209_v4 = vmul.f32 %v207_v1, %v204_v2 }
 0x356   :  { %v237_v5 = vmul.f32 1.442695, %v236_v3  ;;  %211 = vrot.lane.b32.xlu0 %v209_v4, %s353_s1 }
 0x358   :  { %305 = vpow2.f32 %v237_v5 }
 0x35e   :  { %v306_v6 = vpop.eup %305 }
 0x35f   :  { %240 = vrot.lane.b32.xlu1 %v306_v6, %s356_s14 }
 0x3c8   :  { %v212_v7 = vpop.permute.xlu0 %211 }
 0x3c9   :  { %v214_v8 = vadd.f32 %v212_v7, %v448_v19 }
 0x3cb   :  { %307 = vtanh.f32 %v214_v8 }
 0x3d1   :  { %v308_v9 = vpop.eup %307  ;;  %v241_v10 = vpop.permute.xlu1 %240 }
 0x3d2   :  { %218 = vrot.lane.b32.xlu0 %v308_v9, %s354_s4  ;;  %v244_v11 = vsel %vm243_vm12, %v241_v10, 0.0 }
 0x3d3   :  { %245 = vadd.xlane.f32.xlu1 %v244_v11 }
 0x444   :  { %v219_v17 = vpop.permute.xlu0 %218 }
 0x445   :  { %v221_v19 = vmul.f32 %v219_v17, %v216_v18 }
 0x446   :  { %v246_v12 = vpop.xlane.xlu1 %245 }
 0x447   :  { %309 = vlog2.f32 %v246_v12  ;;  %v225_v22 = vadd.f32 %v224_v21, %v221_v19 }
 0x44d   :  { %v310_v13 = vpop.eup %309 }
 0x44e   :  { %v248_v14 = vmul.f32 0.6931472, %v310_v13 }
 0x450   :  { %v249_v15 = vadd.f32 %v248_v14, %v235_v0 }
 0x452   :  { %v250_v16 = vsub.f32 %v181_v48, %v249_v15 }
 0x454   :  { %252 = vrot.lane.b32.xlu0 %v250_v16, %s356_s14 }
 0x45c   :  { %227 = vrot.lane.b32.xlu0 %v225_v22, %s354_s4 }
 0x4c6   :  { %v253_v23 = vpop.permute.xlu0 %252 }
 0x4c7   :  { %255 = vst.msk [vmem:[#allocation5] sm:$0x1] %vm243_vm12, %v253_v23 }
 0x4c8   :  { %266 = dma.vmem_to_hbm [thread:$0]  %s262_s15, 16, %s264_s18, [#allocation6]  }
 0x4ce   :  { %v228_v24 = vpop.permute.xlu0 %227 }
 0x4cf   :  { %231 = vst.msk [vmem:[%s478_s8 - $0x1] sm:$0x2] %vm230_vm13, %v228_v24 }
 0x4d0   :  { %349 = dma.done.wait [#allocation6], 16  }
 0x4d1   :  { %350 = vsyncadd [#allocation6], 4294967280 }
 0x4d2   :  { %275 = vsyncpa [#allocation6], 1 }

</bundles_post_ra>
